<compile_context>
chip_gen: v5e
topology: v5e:2x2
jax: 0.10.0
libtpu: 0.0.40
codegen_flags: <defaults>
</compile_context>

<pallas_src>
import functools
import math

import jax
import jax.numpy as jnp
from jax.experimental import pallas as pl
from jax.experimental.pallas import tpu as pltpu


# ----------------------------------------------------------------------------
# small helpers
# ----------------------------------------------------------------------------
def _round_up(n, m):
    return (n + m - 1) // m * m


def _pack_slab(items):
    """Row-pack 2D arrays into one f32 slab.  Each item starts at an 8-row
    aligned offset; width = max item width, zero-padded.  Returns
    (slab, tuple_of_row_offsets)."""
    width = max(m.shape[1] for m in items)
    offs, r = [], 0
    for m in items:
        offs.append(r)
        r += _round_up(m.shape[0], 8)
    slab = jnp.zeros((r, width), jnp.float32)
    for m, o in zip(items, offs):
        slab = slab.at[o:o + m.shape[0], :m.shape[1]].set(m.astype(jnp.float32))
    return slab, tuple(offs)


def _block_diag(blocks):
    """blocks: (F, din, dout) -> block-diagonal (F*din, F*dout)."""
    F_, din, dout = blocks.shape
    eye = jnp.eye(F_, dtype=blocks.dtype)
    return jnp.einsum('fg,fij->figj', eye, blocks).reshape(F_ * din, F_ * dout)


def _pick_bblk(B, L, max_rows=512):
    """Largest divisor of B that leaves >= 2 grid steps (v7x has 2 TCs) while
    keeping a block's row count small enough for VMEM."""
    best = 1
    for bblk in range(1, B + 1):
        if B % bblk:
            continue
        if bblk * L > max_rows:
            continue
        if B // bblk < 2 and B >= 2:
            continue
        best = bblk
    return best


# ----------------------------------------------------------------------------
# Fused kernel: VSN (block-diag) + interpretable attention, Bblk batches/step.
# ----------------------------------------------------------------------------
def fused_vsn_attn_kernel(x_ref, a_ref, b_ref, out_ref, *,
                          bblk, seq_len, num_features, input_dim, hidden_dim,
                          num_heads, a_offs, b_offs):
    F, D, H, L = num_features, input_dim, hidden_dim, seq_len
    FD, FH = F * D, F * H
    N = bblk * L

    x = x_ref[...].reshape(N, FD)                                   # (Bblk*L, F*D)

    # ---- stage 1: per-feature Linear (block-diag) + gating Linear, one matmul + ReLU
    wfirst = a_ref[a_offs[0]:a_offs[0] + FD, :]                     # (F*D, F*H + H)
    bfirst = a_ref[a_offs[1]:a_offs[1] + 1, :]
    h = jnp.dot(x, wfirst, preferred_element_type=jnp.float32) + bfirst
    h = jnp.maximum(h, 0.0)                                         # (N, F*H + H)
    hv = h[:, :FH]                                                  # (N, F*H)
    hg = h[:, FH:FH + H]                                            # (N, H)

    # ---- stage 2: per-feature second Linear (block-diag) and gating logits
    w2 = b_ref[b_offs[0]:b_offs[0] + FH, :FD]
    b2 = b_ref[b_offs[1]:b_offs[1] + 1, :FD]
    var_out = jnp.dot(hv, w2, preferred_element_type=jnp.float32) + b2      # (N, F*D)

    wg2 = b_ref[b_offs[7]:b_offs[7] + H, :F]
    bg2 = b_ref[b_offs[8]:b_offs[8] + 1, :F]
    logits = jnp.dot(hg, wg2, preferred_element_type=jnp.float32) + bg2     # (N, F)

    # gating softmax over features (exact division; 2e-5 tolerance on weights)
    logits = logits - jnp.max(logits, axis=-1, keepdims=True)
    e = jnp.exp(logits)
    gate_w = e / jnp.sum(e, axis=-1, keepdims=True)                         # (N, F)

    # ---- weighted feature sum folded into the fused QKV matmul:
    #   vsn = sum_f gate_w[:, f] * var_out[:, f*D:(f+1)*D]
    #   q|k|v = vsn @ [wq|wk|wv] == (var_out * (gate_w @ rep)) @ tile([wq|wk|wv], F)
    rep = b_ref[b_offs[2]:b_offs[2] + F, :FD]                               # (F, F*D) constant
    w_full = jnp.dot(gate_w, rep, preferred_element_type=jnp.float32)       # (N, F*D)
    weighted = var_out * w_full

    wqkv = b_ref[b_offs[3]:b_offs[3] + FD, :3 * D]                          # (F*D, 3D)
    bqkv = b_ref[b_offs[4]:b_offs[4] + 1, :3 * D]
    qkv = jnp.dot(weighted, wqkv, preferred_element_type=jnp.float32) + bqkv  # (N, 3D)

    q = qkv[:, :D].reshape(bblk, L, D)
    k = qkv[:, D:2 * D].reshape(bblk, L, D)
    v = qkv[:, 2 * D:3 * D].reshape(bblk, L, D)

    # ---- interpretable attention (num_heads == 1, head_dim == D), per batch elt
    head_dim = D // num_heads
    s = jnp.einsum('bld,bmd->blm', q, k,
                   preferred_element_type=jnp.float32) * (1.0 / math.sqrt(head_dim))
    s = s - jnp.max(s, axis=-1, keepdims=True)
    es = jnp.exp(s)
    p = es / jnp.sum(es, axis=-1, keepdims=True)                            # (Bblk, L, L)

    ao = jnp.einsum('blm,bmd->bld', p, v,
                    preferred_element_type=jnp.float32) / num_heads         # mean over heads (==1)

    wo = b_ref[b_offs[5]:b_offs[5] + D, :D]
    bo = b_ref[b_offs[6]:b_offs[6] + 1, :D]
    out = jnp.dot(ao.reshape(N, D), wo, preferred_element_type=jnp.float32) + bo  # (N, D)

    # ---- single lane-packed output block: [attn_out | vsn_weights | attn_probs]
    out_ref[:, :, :D] = out.reshape(bblk, L, D).astype(out_ref.dtype)
    out_ref[:, :, D:D + F] = gate_w.reshape(bblk, L, F).astype(out_ref.dtype)
    out_ref[:, :, D + F:] = p.astype(out_ref.dtype)


# ----------------------------------------------------------------------------
# Wrapper: weight folding + slab packing + pallas_call
# ----------------------------------------------------------------------------
def vsn_attention_block(x_seq, params, *, num_features, vsn_input_dim,
                        vsn_hidden_dim, attn_heads):
    B, L, F, D = x_seq.shape
    H = vsn_hidden_dim
    assert F == num_features and D == vsn_input_dim
    assert attn_heads == 1, \
        "reference out_proj only type-checks for attn_heads == 1"
    # TODO(synk): out_proj is ill-typed for attn_heads > 1 in the reference module.

    x = x_seq.reshape(B, L, F * D)            # same memory order as torch .view

    # Fold per-feature transforms into block-diag matmuls; gating first layer
    # rides the same first matmul; Q/K/V fused and feature-sum folded in.
    w1_bd = _block_diag(params['w1'])                                   # (F*D, F*H)
    wfirst = jnp.concatenate([w1_bd, params['wg1']], axis=1)            # (F*D, F*H + H)
    bfirst = jnp.concatenate([params['b1'].reshape(1, F * H),
                              params['bg1']], axis=1)                   # (1, F*H + H)
    w2_bd = _block_diag(params['w2'])                                   # (F*H, F*D)
    b2 = params['b2'].reshape(1, F * D)

    rep = jnp.repeat(jnp.eye(F, dtype=jnp.float32), D, axis=1)          # (F, F*D)
    wqkv = jnp.concatenate([params['wq'], params['wk'], params['wv']], axis=1)  # (D, 3D)
    wqkv_fd = jnp.tile(wqkv, (F, 1))                                    # (F*D, 3D)
    bqkv = jnp.concatenate([params['bq'], params['bk'], params['bv']], axis=1)  # (1, 3D)

    slab_a, a_offs = _pack_slab([wfirst, bfirst])
    slab_b, b_offs = _pack_slab([w2_bd, b2, rep, wqkv_fd, bqkv,
                                 params['wo'], params['bo'],
                                 params['wg2'], params['bg2']])

    bblk = _pick_bblk(B, L)
    pack_w = D + F + L

    kern = functools.partial(
        fused_vsn_attn_kernel, bblk=bblk, seq_len=L, num_features=F,
        input_dim=D, hidden_dim=H, num_heads=attn_heads,
        a_offs=a_offs, b_offs=b_offs)

    packed = pl.pallas_call(
        kern,
        out_shape=jax.ShapeDtypeStruct((B, L, pack_w), jnp.float32),
        grid_spec=pltpu.PrefetchScalarGridSpec(
            num_scalar_prefetch=0,
            grid=(B // bblk,),
            in_specs=[
                pl.BlockSpec((bblk, L, F * D), lambda b: (b, 0, 0)),
                pl.BlockSpec(slab_a.shape, lambda b: (0, 0)),   # constant index -> DMA'd once
                pl.BlockSpec(slab_b.shape, lambda b: (0, 0)),
            ],
            out_specs=pl.BlockSpec((bblk, L, pack_w), lambda b: (b, 0, 0)),
        ),
        compiler_params=pltpu.CompilerParams(
            dimension_semantics=("parallel",)),     # batch axis shards across v7x's 2 TCs
    )(x, slab_a, slab_b)

    attn_out = packed[..., :D]
    vsn_w = packed[..., D:D + F]
    attn_probs = packed[..., D + F:][:, None, :, :]        # (B, 1, L, L), heads == 1
    return attn_out, vsn_w, attn_probs


# ----------------------------------------------------------------------------
# Pure-JAX reference (mirrors the PyTorch forward, eval mode)
# ----------------------------------------------------------------------------
def reference(x_seq, p, *, num_heads):
    B, L, F, D = x_seq.shape
    x = x_seq.reshape(B * L, F, D)
    var_out = jnp.stack(
        [jnp.maximum(x[:, i] @ p['w1'][i] + p['b1'][i], 0.0) @ p['w2'][i] + p['b2'][i]
         for i in range(F)], axis=1)                         # (N, F, D)
    flat = x.reshape(B * L, F * D)
    g = jnp.maximum(flat @ p['wg1'] + p['bg1'][0], 0.0) @ p['wg2'] + p['bg2'][0]
    w = jax.nn.softmax(g, axis=-1)
    vsn = jnp.sum(var_out * w[:, :, None], axis=1).reshape(B, L, D)
    vsn_weights = w.reshape(B, L, F)

    hd = D // num_heads
    q = (vsn @ p['wq'] + p['bq'][0]).reshape(B, L, num_heads, hd).transpose(0, 2, 1, 3)
    k = (vsn @ p['wk'] + p['bk'][0]).reshape(B, L, num_heads, hd).transpose(0, 2, 1, 3)
    v = (vsn @ p['wv'] + p['bv'][0]).reshape(B, L, num_heads, hd).transpose(0, 2, 1, 3)
    scores = jnp.einsum('bhqd,bhkd->bhqk', q, k) / math.sqrt(hd)
    probs = jax.nn.softmax(scores, axis=-1)
    ao = jnp.einsum('bhqk,bhkd->bhqd', probs, v)
    ao = ao.transpose(0, 2, 1, 3).reshape(B, L, D)
    ao = ao.reshape(B, L, num_heads, hd).mean(axis=2)
    out = ao @ p['wo'] + p['bo'][0]
    return out, vsn_weights, probs


def init_params(key, *, num_features, input_dim, hidden_dim):
    F, D, H = num_features, input_dim, hidden_dim
    keys = jax.random.split(key, 16)
    n = jax.random.normal
    # weights stored pre-transposed as (in_features, out_features); biases as (1, out)
    return {
        'w1': 0.1 * n(keys[0], (F, D, H), jnp.float32),
        'b1': 0.1 * n(keys[1], (F, H), jnp.float32),
        'w2': 0.1 * n(keys[2], (F, H, D), jnp.float32),
        'b2': 0.1 * n(keys[3], (F, D), jnp.float32),
        'wg1': 0.1 * n(keys[4], (F * D, H), jnp.float32),
        'bg1': 0.1 * n(keys[5], (1, H), jnp.float32),
        'wg2': 0.1 * n(keys[6], (H, F), jnp.float32),
        'bg2': 0.1 * n(keys[7], (1, F), jnp.float32),
        'wq': 0.1 * n(keys[8], (D, D), jnp.float32),
        'bq': 0.1 * n(keys[9], (1, D), jnp.float32),
        'wk': 0.1 * n(keys[10], (D, D), jnp.float32),
        'bk': 0.1 * n(keys[11], (1, D), jnp.float32),
        'wv': 0.1 * n(keys[12], (D, D), jnp.float32),
        'bv': 0.1 * n(keys[13], (1, D), jnp.float32),
        'wo': 0.1 * n(keys[14], (D, D), jnp.float32),
        'bo': 0.1 * n(keys[15], (1, D), jnp.float32),
    }


if __name__ == "__main__":
    # small shapes: batch=4, seq=8, num_features=4, vsn_input_dim=16, hidden=32
    # (batch 4 -> 2 batch elements per grid step, 2 grid steps)
    B, L, F, D, HID = 4, 8, 4, 16, 32
    ATTN_HEADS = 1  # reference module only type-checks for 1 head (see note above)

    key = jax.random.PRNGKey(0)
    kx, kp = jax.random.split(key)
    x_seq = jax.random.normal(kx, (B, L, F, D), jnp.float32)
    params = init_params(kp, num_features=F, input_dim=D, hidden_dim=HID)

    attn_out, vsn_w, attn_probs = vsn_attention_block(
        x_seq, params, num_features=F, vsn_input_dim=D,
        vsn_hidden_dim=HID, attn_heads=ATTN_HEADS)
    jax.block_until_ready((attn_out, vsn_w, attn_probs))

    ref_out, ref_w, ref_probs = reference(x_seq, params, num_heads=ATTN_HEADS)
    assert attn_out.shape == (B, L, D)
    assert vsn_w.shape == (B, L, F)
    assert attn_probs.shape == (B, ATTN_HEADS, L, L)
    assert jnp.allclose(attn_out, ref_out, atol=1e-4, rtol=1e-4)
    assert jnp.allclose(vsn_w, ref_w, atol=2e-5, rtol=1e-4)
    assert jnp.allclose(attn_probs, ref_probs, atol=2e-5, rtol=1e-4)

    print("KERNEL_OK")
</pallas_src>

<mosaic_0001>
module attributes {stable_mosaic.version = 11 : i64} {
  func.func @fused_vsn_attn_kernel(%arg0: i32, %arg1: memref<2x8x64xf32, #tpu.memory_space<vmem>>, %arg2: memref<72x160xf32, #tpu.memory_space<vmem>>, %arg3: memref<280x64xf32, #tpu.memory_space<vmem>>, %arg4: memref<2x8x28xf32, #tpu.memory_space<vmem>>) attributes {dimension_semantics = [#tpu.dimension_semantics<parallel>], iteration_bounds = array<i64: 2>, scalar_prefetch = 0 : i64, scratch_operands = 0 : i64, tpu.core_type = #tpu.core_type<tc>, window_params = [{transform_indices = @transform_0, window_bounds = array<i64: 2, 8, 64>}, {pipeline_mode = #tpu.pipeline_mode<synchronous>, transform_indices = @transform_1, window_bounds = array<i64: 72, 160>}, {pipeline_mode = #tpu.pipeline_mode<synchronous>, transform_indices = @transform_2, window_bounds = array<i64: 280, 64>}, {transform_indices = @transform_3, window_bounds = array<i64: 2, 8, 28>}]} {
    %c0 = arith.constant 0 : index
    %c0_0 = arith.constant 0 : index
    %c0_1 = arith.constant 0 : index
    %0 = vector.load %arg1[%c0, %c0_0, %c0_1] : memref<2x8x64xf32, #tpu.memory_space<vmem>>, vector<2x8x64xf32>
    %1 = vector.shape_cast %0 : vector<2x8x64xf32> to vector<16x64xf32>
    %c0_2 = arith.constant 0 : index
    %c0_3 = arith.constant 0 : index
    %2 = vector.load %arg2[%c0_2, %c0_3] : memref<72x160xf32, #tpu.memory_space<vmem>>, vector<64x160xf32>
    %c64 = arith.constant 64 : index
    %c0_4 = arith.constant 0 : index
    %3 = vector.load %arg2[%c64, %c0_4] : memref<72x160xf32, #tpu.memory_space<vmem>>, vector<1x160xf32>
    %cst = arith.constant dense<0.000000e+00> : vector<16x160xf32>
    %4 = tpu.matmul %1, %2, %cst {dimension_numbers = #tpu.dot_dimension_numbers<[1], [0], [0], [1], [0, 0, 1, 1], [], []>} : vector<16x64xf32>, vector<64x160xf32>, vector<16x160xf32> -> vector<16x160xf32>
    %5 = vector.broadcast %3 : vector<1x160xf32> to vector<16x160xf32>
    %6 = arith.addf %4, %5 : vector<16x160xf32>
    %cst_5 = arith.constant 0.000000e+00 : f32
    %7 = vector.broadcast %cst_5 : f32 to vector<16x160xf32>
    %8 = arith.maximumf %6, %7 : vector<16x160xf32>
    %9 = vector.extract_strided_slice %8 {offsets = [0, 0], sizes = [16, 128], strides = [1, 1]} : vector<16x160xf32> to vector<16x128xf32>
    %10 = vector.extract_strided_slice %8 {offsets = [0, 128], sizes = [16, 32], strides = [1, 1]} : vector<16x160xf32> to vector<16x32xf32>
    %c0_6 = arith.constant 0 : index
    %c0_7 = arith.constant 0 : index
    %11 = vector.load %arg3[%c0_6, %c0_7] : memref<280x64xf32, #tpu.memory_space<vmem>>, vector<128x64xf32>
    %c128 = arith.constant 128 : index
    %c0_8 = arith.constant 0 : index
    %12 = vector.load %arg3[%c128, %c0_8] : memref<280x64xf32, #tpu.memory_space<vmem>>, vector<1x64xf32>
    %cst_9 = arith.constant dense<0.000000e+00> : vector<16x64xf32>
    %13 = tpu.matmul %9, %11, %cst_9 {dimension_numbers = #tpu.dot_dimension_numbers<[1], [0], [0], [1], [0, 0, 1, 1], [], []>} : vector<16x128xf32>, vector<128x64xf32>, vector<16x64xf32> -> vector<16x64xf32>
    %14 = vector.broadcast %12 : vector<1x64xf32> to vector<16x64xf32>
    %15 = arith.addf %13, %14 : vector<16x64xf32>
    %c240 = arith.constant 240 : index
    %c0_10 = arith.constant 0 : index
    %16 = vector.load %arg3[%c240, %c0_10] : memref<280x64xf32, #tpu.memory_space<vmem>>, vector<32x4xf32>
    %c272 = arith.constant 272 : index
    %c0_11 = arith.constant 0 : index
    %17 = vector.load %arg3[%c272, %c0_11] : memref<280x64xf32, #tpu.memory_space<vmem>>, vector<1x4xf32>
    %cst_12 = arith.constant dense<0.000000e+00> : vector<16x4xf32>
    %18 = tpu.matmul %10, %16, %cst_12 {dimension_numbers = #tpu.dot_dimension_numbers<[1], [0], [0], [1], [0, 0, 1, 1], [], []>} : vector<16x32xf32>, vector<32x4xf32>, vector<16x4xf32> -> vector<16x4xf32>
    %19 = vector.broadcast %17 : vector<1x4xf32> to vector<16x4xf32>
    %20 = arith.addf %18, %19 : vector<16x4xf32>
    %cst_13 = arith.constant dense<0xFF800000> : vector<16xf32>
    %21 = vector.multi_reduction <maximumf>, %20, %cst_13 [1] : vector<16x4xf32> to vector<16xf32>
    %22 = vector.shape_cast %21 : vector<16xf32> to vector<16x1xf32>
    %23 = vector.broadcast %22 : vector<16x1xf32> to vector<16x4xf32>
    %24 = arith.subf %20, %23 : vector<16x4xf32>
    %25 = math.exp %24 : vector<16x4xf32>
    %cst_14 = arith.constant dense<0.000000e+00> : vector<16xf32>
    %26 = vector.multi_reduction <add>, %25, %cst_14 [1] : vector<16x4xf32> to vector<16xf32>
    %27 = vector.shape_cast %26 : vector<16xf32> to vector<16x1xf32>
    %28 = vector.broadcast %27 : vector<16x1xf32> to vector<16x4xf32>
    %29 = arith.divf %25, %28 : vector<16x4xf32>
    %c136 = arith.constant 136 : index
    %c0_15 = arith.constant 0 : index
    %30 = vector.load %arg3[%c136, %c0_15] : memref<280x64xf32, #tpu.memory_space<vmem>>, vector<4x64xf32>
    %cst_16 = arith.constant dense<0.000000e+00> : vector<16x64xf32>
    %31 = tpu.matmul %29, %30, %cst_16 {dimension_numbers = #tpu.dot_dimension_numbers<[1], [0], [0], [1], [0, 0, 1, 1], [], []>} : vector<16x4xf32>, vector<4x64xf32>, vector<16x64xf32> -> vector<16x64xf32>
    %32 = arith.mulf %15, %31 : vector<16x64xf32>
    %c144 = arith.constant 144 : index
    %c0_17 = arith.constant 0 : index
    %33 = vector.load %arg3[%c144, %c0_17] : memref<280x64xf32, #tpu.memory_space<vmem>>, vector<64x48xf32>
    %c208 = arith.constant 208 : index
    %c0_18 = arith.constant 0 : index
    %34 = vector.load %arg3[%c208, %c0_18] : memref<280x64xf32, #tpu.memory_space<vmem>>, vector<1x48xf32>
    %cst_19 = arith.constant dense<0.000000e+00> : vector<16x48xf32>
    %35 = tpu.matmul %32, %33, %cst_19 {dimension_numbers = #tpu.dot_dimension_numbers<[1], [0], [0], [1], [0, 0, 1, 1], [], []>} : vector<16x64xf32>, vector<64x48xf32>, vector<16x48xf32> -> vector<16x48xf32>
    %36 = vector.broadcast %34 : vector<1x48xf32> to vector<16x48xf32>
    %37 = arith.addf %35, %36 : vector<16x48xf32>
    %38 = vector.extract_strided_slice %37 {offsets = [0, 0], sizes = [16, 16], strides = [1, 1]} : vector<16x48xf32> to vector<16x16xf32>
    %39 = vector.shape_cast %38 : vector<16x16xf32> to vector<2x8x16xf32>
    %40 = vector.extract_strided_slice %37 {offsets = [0, 16], sizes = [16, 16], strides = [1, 1]} : vector<16x48xf32> to vector<16x16xf32>
    %41 = vector.shape_cast %40 : vector<16x16xf32> to vector<2x8x16xf32>
    %42 = vector.extract_strided_slice %37 {offsets = [0, 32], sizes = [16, 16], strides = [1, 1]} : vector<16x48xf32> to vector<16x16xf32>
    %43 = vector.shape_cast %42 : vector<16x16xf32> to vector<2x8x16xf32>
    "tpu.trace_start"() <{level = 10 : i32, message = "bld,bmd->blm"}> : () -> ()
    %cst_20 = arith.constant dense<0.000000e+00> : vector<2x8x8xf32>
    %44 = tpu.matmul %39, %41, %cst_20 {dimension_numbers = #tpu.dot_dimension_numbers<[2], [2], [1], [1], [0, 0, 0, 1, 1, 1], [0], [0]>} : vector<2x8x16xf32>, vector<2x8x16xf32>, vector<2x8x8xf32> -> vector<2x8x8xf32>
    "tpu.trace_stop"() : () -> ()
    %cst_21 = arith.constant 2.500000e-01 : f32
    %45 = vector.broadcast %cst_21 : f32 to vector<2x8x8xf32>
    %46 = arith.mulf %44, %45 : vector<2x8x8xf32>
    %cst_22 = arith.constant dense<0xFF800000> : vector<2x8xf32>
    %47 = vector.multi_reduction <maximumf>, %46, %cst_22 [2] : vector<2x8x8xf32> to vector<2x8xf32>
    %48 = vector.shape_cast %47 : vector<2x8xf32> to vector<2x8x1xf32>
    %49 = vector.broadcast %48 : vector<2x8x1xf32> to vector<2x8x8xf32>
    %50 = arith.subf %46, %49 : vector<2x8x8xf32>
    %51 = math.exp %50 : vector<2x8x8xf32>
    %cst_23 = arith.constant dense<0.000000e+00> : vector<2x8xf32>
    %52 = vector.multi_reduction <add>, %51, %cst_23 [2] : vector<2x8x8xf32> to vector<2x8xf32>
    %53 = vector.shape_cast %52 : vector<2x8xf32> to vector<2x8x1xf32>
    %54 = vector.broadcast %53 : vector<2x8x1xf32> to vector<2x8x8xf32>
    %55 = arith.divf %51, %54 : vector<2x8x8xf32>
    "tpu.trace_start"() <{level = 10 : i32, message = "blm,bmd->bld"}> : () -> ()
    %cst_24 = arith.constant dense<0.000000e+00> : vector<2x8x16xf32>
    %56 = tpu.matmul %55, %43, %cst_24 {dimension_numbers = #tpu.dot_dimension_numbers<[2], [1], [1], [2], [0, 0, 0, 1, 1, 2], [0], [0]>} : vector<2x8x8xf32>, vector<2x8x16xf32>, vector<2x8x16xf32> -> vector<2x8x16xf32>
    "tpu.trace_stop"() : () -> ()
    %cst_25 = arith.constant 1.000000e+00 : f32
    %57 = vector.broadcast %cst_25 : f32 to vector<2x8x16xf32>
    %58 = arith.divf %56, %57 : vector<2x8x16xf32>
    %c216 = arith.constant 216 : index
    %c0_26 = arith.constant 0 : index
    %59 = vector.load %arg3[%c216, %c0_26] : memref<280x64xf32, #tpu.memory_space<vmem>>, vector<16x16xf32>
    %c232 = arith.constant 232 : index
    %c0_27 = arith.constant 0 : index
    %60 = vector.load %arg3[%c232, %c0_27] : memref<280x64xf32, #tpu.memory_space<vmem>>, vector<1x16xf32>
    %61 = vector.shape_cast %58 : vector<2x8x16xf32> to vector<16x16xf32>
    %cst_28 = arith.constant dense<0.000000e+00> : vector<16x16xf32>
    %62 = tpu.matmul %61, %59, %cst_28 {dimension_numbers = #tpu.dot_dimension_numbers<[1], [0], [0], [1], [0, 0, 1, 1], [], []>} : vector<16x16xf32>, vector<16x16xf32>, vector<16x16xf32> -> vector<16x16xf32>
    %63 = vector.broadcast %60 : vector<1x16xf32> to vector<16x16xf32>
    %64 = arith.addf %62, %63 : vector<16x16xf32>
    %65 = vector.shape_cast %64 : vector<16x16xf32> to vector<2x8x16xf32>
    %c0_29 = arith.constant 0 : index
    %c0_30 = arith.constant 0 : index
    %c0_31 = arith.constant 0 : index
    %66 = vector.load %arg4[%c0_29, %c0_30, %c0_31] : memref<2x8x28xf32, #tpu.memory_space<vmem>>, vector<2x8x16xf32>
    tpu.vector_store %arg4[%c0_29, %c0_30, %c0_31], %65 {strides = array<i32>} : memref<2x8x28xf32, #tpu.memory_space<vmem>>, vector<2x8x16xf32>,
    %67 = vector.shape_cast %29 : vector<16x4xf32> to vector<2x8x4xf32>
    %c0_32 = arith.constant 0 : index
    %c0_33 = arith.constant 0 : index
    %c16 = arith.constant 16 : index
    %68 = vector.load %arg4[%c0_32, %c0_33, %c16] : memref<2x8x28xf32, #tpu.memory_space<vmem>>, vector<2x8x4xf32>
    tpu.vector_store %arg4[%c0_32, %c0_33, %c16], %67 {strides = array<i32>} : memref<2x8x28xf32, #tpu.memory_space<vmem>>, vector<2x8x4xf32>,
    %c0_34 = arith.constant 0 : index
    %c0_35 = arith.constant 0 : index
    %c20 = arith.constant 20 : index
    %69 = vector.load %arg4[%c0_34, %c0_35, %c20] : memref<2x8x28xf32, #tpu.memory_space<vmem>>, vector<2x8x8xf32>
    tpu.vector_store %arg4[%c0_34, %c0_35, %c20], %55 {strides = array<i32>} : memref<2x8x28xf32, #tpu.memory_space<vmem>>, vector<2x8x8xf32>,
    return
  }
  func.func @transform_0(%arg0: i32) -> (i32, i32, i32) {
    %c0_i32 = arith.constant 0 : i32
    %c0_i32_0 = arith.constant 0 : i32
    %c0_i32_1 = arith.constant 0 : i32
    return %arg0, %c0_i32, %c0_i32_0 : i32, i32, i32
  }
  func.func @transform_1(%arg0: i32) -> (i32, i32) {
    %c0_i32 = arith.constant 0 : i32
    %c0_i32_0 = arith.constant 0 : i32
    %c0_i32_1 = arith.constant 0 : i32
    return %c0_i32, %c0_i32_0 : i32, i32
  }
  func.func @transform_2(%arg0: i32) -> (i32, i32) {
    %c0_i32 = arith.constant 0 : i32
    %c0_i32_0 = arith.constant 0 : i32
    %c0_i32_1 = arith.constant 0 : i32
    return %c0_i32, %c0_i32_0 : i32, i32
  }
  func.func @transform_3(%arg0: i32) -> (i32, i32, i32) {
    %c0_i32 = arith.constant 0 : i32
    %c0_i32_0 = arith.constant 0 : i32
    %c0_i32_1 = arith.constant 0 : i32
    return %arg0, %c0_i32, %c0_i32_0 : i32, i32, i32
  }
}

</mosaic_0001>

<bundles_post_ra>
// kernel: tpu_custom_call.1
= control target key start
LH: loop header
LB: loop body
LE: loop exit
PB: predicated region body
PF: predicated region fallthrough
CT: control target
= control target key end

     0   :  { %8 = vsyncpa [#allocation3], 0  ;;  %s1218_s0 = inlined_call_operand.vmem [shape: f32[4,8,64], index: 0, kind: input, shape index: {}]   ;;  %s1219_s1 = inlined_call_operand.vmem [shape: f32[72,160], index: 1, kind: input, shape index: {}]   ;;  %s1220_s2 = inlined_call_operand.vmem [shape: f32[280,64], index: 2, kind: input, shape index: {}]   ;;  %s1221_s3 = inlined_call_operand.hbm [shape: f32[4,8,28], index: 3, kind: output, shape index: {}]  }
   0x1   :  { %10 = vsyncpa [#allocation3 + $0x1], 0  ;;  %s932_s12 = smov 0   ;;  %s934_s13 = smov 0  }
   0x2   :  { %s936_s14 = smov 0   ;;  %s938_s15 = smov 0  }
   0x3 LB: > { %s953_s16 = sadd.s32 4294967295, %s904_s15   ;;  %s744_s17 = sadd.s32 4294967294, %s904_s15   ;;  %s904_s15 = sphi %s938_s15, %s1227_s15   ;;  %s900_s14 = sphi %s936_s14, %s1226_s14   ;;  %s896_s13 = sphi %s934_s13, %s1225_s13   ;;  %s892_s12 = sphi %s932_s12, %s1224_s12  }
   0x4   : > { %s957_s18 = sadd.s32 1, %s904_s15   ;;  %s91_s19 = sadd.s32 1, %s900_s14 }
   0x5   : > { %s88_s20 = ssub.s32 %s904_s15, %s957_s18  ;;  %p101_p0 = scmp.ne.s32.totalorder %s900_s14, %s896_s13 }
   0x6   : > { %p89_p1 = scmp.eq.s32.totalorder %s88_s20, 0  ;;  %p102_p2 = scmp.eq.s32.totalorder %s953_s16, 1 }
   0x7   : > { %p107_p3 = scmp.ne.s32.totalorder %s896_s13, %s892_s12  ;;  %p108_p4 = scmp.eq.s32.totalorder %s744_s17, 1 }
   0x8   : > { %s968_s21 = scalar_select %p89_p1, %s900_s14, %s91_s19  }
   0x9   : > { %p970_p5 = por %p102_p2, %p101_p0  ;;  %p974_p6 = por %p108_p4, %p107_p3 }
   0xa   : > { %p747_p7 = scmp.ge.s32.totalorder %s904_s15, 1  ;;  %p141_p8 = scmp.lt.s32.totalorder %s904_s15, 3 }
   0xc   : > { %p142_p9 = pnand %p747_p7, %p141_p8 }
   0xd   : > { %s749_s28 = sshll.u32 (!%p142_p9), %s953_s16, 1  ;;  %s907_s11 = smov (!%p142_p9), 96  }
   0xe   : > { %145 = sbr.rel (%p142_p9) target bundleno = 1591 (0x637), region = 32  ;;  %p166_p10 = scmp.lt.s32.totalorder (!%p142_p9), %s749_s28, 3 }
   0xf   : > { %s908_s17 = smov (!%p142_p9), 16   ;;  %s909_s19 = smov (!%p142_p9), 20  }
  0x10   : > { %s162_s27 = sand.u32 (!%p142_p9), 1, %s896_s13   ;;  %s776_s4 = sshll.u32 (!%p142_p9), %s953_s16, 4 }
  0x11   : > { %s748_s29 = sshll.u32 (!%p142_p9), %s162_s27, 4  ;;  %s678_s8 = scalar_lea.hbm (!%p142_p9), %s1221_s3, %s776_s4 }
  0x12   : > { %s164_s5 = scalar_lea.vmem (!%p142_p9), [#allocation2], %s748_s29  ;;  %s667_s16 = scalar_lea.sflag (!%p142_p9), [#allocation3], %s162_s27 }
  0x13   : > { %v189_v0 = vld [vmem:[%s1219_s1 + $0x78] sm:$0xff]  ;;  %v187_v1 = vld [vmem:[%s1219_s1 + $0x68] sm:$0xff]  ;;  %s1229_s28 = smov (!%p166_p10, %s749_s28), 3  ;;  %vm197_vm0 = vcmask 523264   ;;  %v297_v11 = vld [vmem:[%s1220_s2 + $0x100] sm:$0xff]  ;;  %vm301_vm1 = vcmask 261120  }
  0x14   : > { %235 = vmatpush.msra.mxu1 %v189_v0  ;;  %v185_v2 = vld [vmem:[%s1219_s1 + $0x58] sm:$0xff]  ;;  %v298_v3 = vld [vmem:[%s1220_s2 + $0x108] sm:$0xff]  ;;  %s750_s10 = sshll.u32 %s1229_s28, 3  ;;  %v295_v13 = vld [vmem:[%s1220_s2 + $0xf0] sm:$0xff]  ;;  %vm331_vm2 = vcmask 31744   ;;  %vm387_vm3 = vcmask 1043456  }
  0x15   : > { %320 = vmatpush.msra.mxu3 %v298_v3  ;;  %v183_v4 = vld [vmem:[%s1219_s1 + $0x48] sm:$0xff]  ;;  %v181_v5 = vld [vmem:[%s1219_s1 + $0x38] sm:$0xff]  ;;  %s169_s26 = scalar_lea.vmem %s1218_s0, %s750_s10  ;;  %v822_v22 = vld [vmem:[%s1220_s2 + $0x110] ss:$0 sm:$0xff]  ;;  %s906_s10 = smov 112   ;;  %vm458_vm12 = vcmask 130048  }
  0x16   : > { %236 = vmatpush.msra.mxu1 %v187_v1  ;;  %v179_v6 = vld [vmem:[%s1219_s1 + $0x28] sm:$0xff]  ;;  %v177_v7 = vld [vmem:[%s1219_s1 + $0x18] sm:$0xff]  ;;  %v172_v9 = vld [vmem:[%s169_s26] sm:$0xff]  ;;  %vm512_vm13 = vcmask 64512   ;;  %s679_s9 = sshll.u32 %s164_s5, 4  ;;  %s862_s24 = scalar_lea.hbm %s1221_s3, 32  ;;  %s680_s9 = int_to_ptr.vmem [resolvable:$true] %s679_s9 }
  0x17   : > { %v175_v8 = vld [vmem:[%s1219_s1 + $0x8] sm:$0xff]  ;;  %321 = vmatpush.msra.mxu3 %v297_v11  ;;  %v296_v12 = vld [vmem:[%s1220_s2 + $0xf8] sm:$0xff]  ;;  %v188_v29 = vld [vmem:[%s1219_s1 + $0x70] sm:$0xff] }
  0x18   : > { %237 = vmatpush.msra.mxu1 %v185_v2  ;;  %v173_v10 = vld [vmem:[%s169_s26 + $0x8] sm:$0xff]  ;;  %212 = vmatpush.msra.mxu0 %v188_v29  ;;  %v186_v30 = vld [vmem:[%s1219_s1 + $0x60] sm:$0xff]  ;;  %v184_v31 = vld [vmem:[%s1219_s1 + $0x50] sm:$0xff] }
  0x19   : > { %322 = vmatpush.msra.mxu3 %v296_v12  ;;  %v1025_v14 = vld [vmem:[%s1219_s1 + $0x80] ss:$8 sm:$0x3]  ;;  %v180_v33 = vld [vmem:[%s1219_s1 + $0x30] sm:$0xff]  ;;  %v269_v37 = vld [vmem:[%s1220_s2 + $0x78] sm:$0xff] }
  0x1a   : > { %238 = vmatpush.msra.mxu1 %v183_v4  ;;  %v194_v15 = vperm.slane %v1025_v14, 1  ;;  %213 = vmatpush.msra.mxu0 %v186_v30  ;;  %v182_v32 = vld [vmem:[%s1219_s1 + $0x40] sm:$0xff]  ;;  %v176_v35 = vld [vmem:[%s1219_s1 + $0x10] sm:$0xff]  ;;  %v267_v39 = vld [vmem:[%s1220_s2 + $0x68] sm:$0xff]  ;;  %v193_v60 = vperm.slane %v1025_v14, 0 }
  0x1b   : > { %323 = vmatpush.msra.mxu3 %v295_v13  ;;  %v178_v34 = vld [vmem:[%s1219_s1 + $0x20] sm:$0xff]  ;;  %v268_v38 = vld [vmem:[%s1220_s2 + $0x70] sm:$0xff]  ;;  %272 = vmatpush.msra.mxu2 %v269_v37  ;;  %v265_v41 = vld [vmem:[%s1220_s2 + $0x58] sm:$0xff] }
  0x1c   : > { %239 = vmatpush.msra.mxu1 %v181_v5  ;;  %214 = vmatpush.msra.mxu0 %v184_v31  ;;  %v174_v36 = vld [vmem:[%s1219_s1] sm:$0xff]  ;;  %v264_v42 = vld [vmem:[%s1220_s2 + $0x50] sm:$0xff]  ;;  %v263_v43 = vld [vmem:[%s1220_s2 + $0x48] sm:$0xff] }
  0x1d   : > { %273 = vmatpush.msra.mxu2 %v268_v38  ;;  %v266_v40 = vld [vmem:[%s1220_s2 + $0x60] sm:$0xff]  ;;  %v261_v55 = vld [vmem:[%s1220_s2 + $0x38] sm:$0xff]  ;;  %v260_v56 = vld [vmem:[%s1220_s2 + $0x30] sm:$0xff] }
  0x1e   : > { %240 = vmatpush.msra.mxu1 %v179_v6  ;;  %215 = vmatpush.msra.mxu0 %v182_v32  ;;  %v262_v54 = vld [vmem:[%s1220_s2 + $0x40] sm:$0xff]  ;;  %v259_v57 = vld [vmem:[%s1220_s2 + $0x28] sm:$0xff]  ;;  %v257_v59 = vld [vmem:[%s1220_s2 + $0x18] sm:$0xff] }
  0x1f   : > { %274 = vmatpush.msra.mxu2 %v267_v39  ;;  %v258_v58 = vld [vmem:[%s1220_s2 + $0x20] sm:$0xff]  ;;  %v256_v61 = vld [vmem:[%s1220_s2 + $0x10] sm:$0xff]  ;;  %v255_v0 = vld [vmem:[%s1220_s2 + $0x8] sm:$0xff] }
  0x20   : > { %241 = vmatpush.msra.mxu1 %v177_v7  ;;  %216 = vmatpush.msra.mxu0 %v180_v33  ;;  %v254_v2 = vld [vmem:[%s1220_s2] sm:$0xff]  ;;  %v380_v3 = vld [vmem:[%s1220_s2 + $0x88] sm:$0xf]  ;;  %v420_v11 = vld [vmem:[%s1220_s2 + $0xb0] sm:$0xff] }
  0x21   : > { %275 = vmatpush.msra.mxu2 %v266_v40  ;;  %758 = vmatpush.msk.msrb.mxu3 %vm387_vm3, %v380_v3  ;;  %v423_v7 = vld [vmem:[%s1220_s2 + $0xc8] sm:$0xff]  ;;  %v417_v37 = vld [vmem:[%s1220_s2 + $0x98] sm:$0xff]  ;;  %v416_v38 = vld [vmem:[%s1220_s2 + $0x90] sm:$0xff] }
  0x22   : > { %242 = vmatpush.msra.mxu1 %v175_v8  ;;  %217 = vmatpush.msra.mxu0 %v178_v34  ;;  %v422_v8 = vld [vmem:[%s1220_s2 + $0xc0] sm:$0xff]  ;;  %v419_v12 = vld [vmem:[%s1220_s2 + $0xa8] sm:$0xff] }
  0x23   : > { %754 = vmatmul.msk.f32.vlgmr.msra.gmra.mxu1 %vm197_vm0, %v172_v9  ;;  %276 = vmatpush.msra.mxu2 %v265_v41  ;;  %v823_v40 = vld [vmem:[%s1220_s2 + $0x80] ss:$0 sm:$0xff] }
  0x24   : > { %218 = vmatpush.msra.mxu0 %v176_v35 }
  0x25   : > { %277 = vmatpush.msra.mxu2 %v264_v42 }
  0x26   : > { %219 = vmatpush.msra.mxu0 %v174_v36  ;;  %v418_v36 = vld [vmem:[%s1220_s2 + $0xa0] sm:$0xff] }
  0x27   : > { %752 = vmatmul.msk.f32.vlgmr.msra.gmra.mxu0 %vm197_vm0, %v172_v9  ;;  %278 = vmatpush.msra.mxu2 %v263_v43  ;;  %v421_v9 = vld [vmem:[%s1220_s2 + $0xb8] sm:$0xff] }
  0x28   : > { %440 = vmatpush.msrb.mxu0 %v423_v7 }
  0x29   : > { %279 = vmatpush.msra.mxu2 %v262_v54 }
  0x2a   : > { %441 = vmatpush.msrb.mxu0 %v422_v8 }
  0x2b   : > { %755 = vmatmul.msk.f32.gmra.mxu1 %vm197_vm0, %v173_v10  ;;  %280 = vmatpush.msra.mxu2 %v261_v55 }
  0x2c   : > { %442 = vmatpush.msrb.mxu0 %v421_v9 }
  0x2d   : > { %281 = vmatpush.msra.mxu2 %v260_v56 }
  0x2e   : > { %443 = vmatpush.msrb.mxu0 %v420_v11 }
  0x2f   : > { %753 = vmatmul.msk.f32.gmra.mxu0 %vm197_vm0, %v173_v10  ;;  %282 = vmatpush.msra.mxu2 %v259_v57 }
  0x30   : > { %444 = vmatpush.msrb.mxu0 %v419_v12 }
  0x31   : > { %283 = vmatpush.msra.mxu2 %v258_v58 }
  0x32   : > { %445 = vmatpush.msrb.mxu0 %v418_v36 }
  0x33   : > { %284 = vmatpush.msra.mxu2 %v257_v59 }
  0x34   : > { %446 = vmatpush.msrb.mxu0 %v417_v37 }
  0x35   : > { %285 = vmatpush.msra.mxu2 %v256_v61 }
  0x36   : > { %447 = vmatpush.msrb.mxu0 %v416_v38  ;;  %v825_v38 = vld [vmem:[%s1220_s2 + $0xe8] ss:$0 sm:$0xff] }
  0x37   : > { %286 = vmatpush.msra.mxu2 %v255_v0 }
  0x39   : > { %287 = vmatpush.msra.mxu2 %v254_v2 }
  0xa0   : > { %v244_v16 = vpop.f32.mrf.mxu1 }
  0xa1   : > { %v245_v17 = vadd.f32 %v244_v16, %v194_v15 }
  0xa3   : > { %v251_v18 = vmax.f32 %v245_v17, 0.0 }
  0xa4   : > { %v221_v62 = vpop.f32.mrf.mxu0 }
  0xa5   : > { %756 = vmatmul.msk.f32.vlgmr.msra.gmra.mxu3 %vm301_vm1, %v251_v18  ;;  %v222_v63 = vadd.f32 %v221_v62, %v193_v60 }
  0xa7   : > { %v250_v1 = vmax.f32 %v222_v63, 0.0 }
  0xa8   : > { %v247_v19 = vpop.f32.mrf.mxu1 }
  0xa9   : > { %v248_v20 = vadd.f32 %v247_v19, %v194_v15  ;;  %288 = vmatmul.f32.vlgmr.msra.gmra.mxu2 %v250_v1 }
  0xab   : > { %v253_v21 = vmax.f32 %v248_v20, 0.0 }
  0xac   : > { %v224_v4 = vpop.f32.mrf.mxu0 }
  0xad   : > { %757 = vmatmul.msk.f32.gmra.mxu3 %vm301_vm1, %v253_v21  ;;  %v225_v5 = vadd.f32 %v224_v4, %v193_v60 }
  0xaf   : > { %v252_v6 = vmax.f32 %v225_v5, 0.0 }
  0xb1   : > { %291 = vmatmul.f32.gmra.mxu2 %v252_v6 }
 0x128   : > { %v325_v23 = vpop.f32.mrf.mxu3 }
 0x129   : > { %v326_v24 = vadd.f32 %v822_v22, %v325_v23 }
 0x12b   : > { %v332_v25 = vsel %vm331_vm2, %v326_v24, -inf }
 0x12c   : > { %333 = vmax.xlane.f32.xlu0 %v332_v25  ;;  %v289_v39 = vpop.f32.mrf.mxu2 }
 0x12d   : > { %v290_v41 = vadd.f32 %v823_v40, %v289_v39 }
 0x130   : > { %v328_v26 = vpop.f32.mrf.mxu3 }
 0x131   : > { %v329_v27 = vadd.f32 %v822_v22, %v328_v26 }
 0x133   : > { %v335_v28 = vsel %vm331_vm2, %v329_v27, -inf }
 0x134   : > { %336 = vmax.xlane.f32.xlu0 %v335_v28 }
 0x19f   : > { %v334_v44 = vpop.xlane.xlu0 %333 }
 0x1a0   : > { %v338_v45 = vsub.f32 %v326_v24, %v334_v44  ;;  %v292_v44 = vpop.f32.mrf.mxu2 }
 0x1a2   : > { %v340_v46 = vmul.f32 1.442695, %v338_v45  ;;  %v293_v45 = vadd.f32 %v823_v40, %v292_v44 }
 0x1a4   : > { %826 = vpow2.f32 %v340_v46 }
 0x1a7   : > { %v337_v47 = vpop.xlane.xlu0 %336 }
 0x1a8   : > { %v339_v48 = vsub.f32 %v329_v27, %v337_v47 }
 0x1aa   : > { %v1080_v49 = vpop.eup %826  ;;  %v342_v50 = vmul.f32 1.442695, %v339_v48  ;;  %v824_v48 = vld [vmem:[%s1220_s2 + $0xd0] ss:$0 sm:$0xff] }
 0x1ab   : > { %v344_v51 = vsel %vm331_vm2, %v1080_v49, 0.0 }
 0x1ac   : > { %828 = vpow2.f32 %v342_v50  ;;  %345 = vadd.xlane.f32.xlu1 %v344_v51 }
 0x1b2   : > { %v1084_v52 = vpop.eup %828 }
 0x1b3   : > { %v347_v53 = vsel %vm331_vm2, %v1084_v52, 0.0 }
 0x1b4   : > { %348 = vadd.xlane.f32.xlu1 %v347_v53 }
 0x21f   : > { %v346_v10 = vpop.xlane.xlu1 %345 }
 0x220   : > { %830 = vrcp.f32 %v346_v10  ;;  %v361_v17 = vand.u32 2147483648, %v346_v10  ;;  %v359_v19 = vand.u32 2147483647, %v346_v10  ;;  %vm355_vm5 = vweird.f32 %v346_v10 }
 0x222   : > { %v362_v22 = vor.u32 1.1754944e-38, %v361_v17  ;;  %vm360_vm7 = vcmp.eq.f32.partialorder %v359_v19, 8.507059e+37 }
 0x226   : > { %v831_v13 = vpop.eup %830 }
 0x227   : > { %v351_v14 = vmul.f32 %v831_v13, %v346_v10  ;;  %v349_v15 = vpop.xlane.xlu1 %348  ;;  %vm356_vm4 = vweird.f32 %v831_v13 }
 0x228   : > { %832 = vrcp.f32 %v349_v15  ;;  %vm357_vm6 = vmor %vm355_vm5, %vm356_vm4  ;;  %v376_v28 = vand.u32 2147483648, %v349_v15  ;;  %v374_v30 = vand.u32 2147483647, %v349_v15  ;;  %vm370_vm9 = vweird.f32 %v349_v15 }
 0x229   : > { %v352_v16 = vsub.f32 1.0, %v351_v14 }
 0x22a   : > { %v377_v32 = vor.u32 1.1754944e-38, %v376_v28  ;;  %vm375_vm11 = vcmp.eq.f32.partialorder %v374_v30, 8.507059e+37 }
 0x22b   : > { %v353_v18 = vmul.f32 %v831_v13, %v352_v16 }
 0x22d   : > { %v354_v20 = vadd.f32 %v831_v13, %v353_v18 }
 0x22e   : > { %v833_v21 = vpop.eup %832 }
 0x22f   : > { %v366_v23 = vmul.f32 %v833_v21, %v349_v15  ;;  %v358_v24 = vsel %vm357_vm6, %v831_v13, %v354_v20  ;;  %vm371_vm8 = vweird.f32 %v833_v21  ;;  %vm654_vm6 = vcmask 162944  }
 0x230   : > { %v363_v25 = vsel %vm360_vm7, %v362_v22, %v358_v24  ;;  %vm372_vm10 = vmor %vm370_vm9, %vm371_vm8  ;;  %vm663_vm7 = vcmask 228512  }
 0x231   : > { %v367_v26 = vsub.f32 1.0, %v366_v23  ;;  %v364_v27 = vmul.f32 %v1080_v49, %v363_v25 }
 0x233   : > { %v368_v29 = vmul.f32 %v833_v21, %v367_v26  ;;  %759 = vmatmul.msk.f32.vlgmr.msrb.gmra.mxu3 %vm331_vm2, %v364_v27 }
 0x235   : > { %v369_v31 = vadd.f32 %v833_v21, %v368_v29 }
 0x237   : > { %v373_v33 = vsel %vm372_vm10, %v833_v21, %v369_v31 }
 0x238   : > { %v378_v34 = vsel %vm375_vm11, %v377_v32, %v373_v33  ;;  %v614_v33 = vld [vmem:[%s1220_s2 + $0xe0] sm:$0xff] }
 0x239   : > { %v1137_v35 = vmul.f32 %v1084_v52, %v378_v34  ;;  %v613_v34 = vld [vmem:[%s1220_s2 + $0xd8] sm:$0xff] }
 0x23b   : > { %760 = vmatmul.msk.f32.gmra.mxu3 %vm331_vm2, %v1137_v35 }
 0x2b6   : > { %v408_v42 = vpop.f32.mrf.mxu3 }
 0x2b7   : > { %v414_v43 = vmul.f32 %v408_v42, %v290_v41 }
 0x2b9   : > { %761 = vmatmul.msk.f32.vlgmr.msrb.gmra.mxu0 %vm197_vm0, %v414_v43 }
 0x2be   : > { %v411_v46 = vpop.f32.mrf.mxu3 }
 0x2bf   : > { %v415_v47 = vmul.f32 %v411_v46, %v293_v45 }
 0x2c1   : > { %762 = vmatmul.msk.f32.gmra.mxu0 %vm197_vm0, %v415_v47 }
 0x336   : > { %v449_v49 = vpop.f32.mrf.mxu0 }
 0x337   : > { %v450_v50 = vadd.f32 %v824_v48, %v449_v49 }
 0x339   : > { %456 = vrot.lane.b32.xlu2 %v450_v50, %s906_s10 }
 0x33e   : > { %v452_v51 = vpop.f32.mrf.mxu0 }
 0x33f   : > { %v453_v52 = vadd.f32 %v824_v48, %v452_v51 }
 0x341   : > { %484 = vrot.lane.b32.xlu2 %v453_v52, %s906_s10  ;;  %s681_s10 = sshll.u32 %s678_s8, 4  ;;  %s682_s10 = int_to_ptr.hbm [resolvable:$true] %s681_s10 }
 0x393   : > { %v457_v53 = vpop.permute.xlu2 %456 }
 0x394   : > { %763 = vmatpush.xpose.msk.msrb.mxu2 %vm458_vm12, %v457_v53 }
 0x397   : > { %764 = vmatmul.msk.f32.vlgmr.msrb.gmra.mxu2 %vm458_vm12, %v450_v50 }
 0x39b   : > { %v485_v54 = vpop.permute.xlu2 %484 }
 0x39c   : > { %765 = vmatpush.xpose.msk.msrb.mxu1 %vm458_vm12, %v485_v54 }
 0x39f   : > { %766 = vmatmul.msk.f32.vlgmr.msrb.gmra.mxu1 %vm458_vm12, %v453_v52 }
 0x3a0   : > { %637 = vmatpush.msra.mxu1 %v614_v33 }
 0x3a2   : > { %638 = vmatpush.msra.mxu1 %v613_v34 }
 0x41a   : > { %v480_v55 = vpop.f32.mrf.mxu2 }
 0x41b   : > { %v510_v56 = vmul.f32 0.25, %v480_v55 }
 0x41c   : > { %v507_v57 = vpop.f32.mrf.mxu1 }
 0x41d   : > { %v511_v58 = vmul.f32 0.25, %v507_v57  ;;  %v513_v59 = vsel %vm512_vm13, %v510_v56, -inf }
 0x41e   : > { %514 = vmax.xlane.f32.xlu0 %v513_v59 }
 0x41f   : > { %v516_v60 = vsel %vm512_vm13, %v511_v58, -inf }
 0x420   : > { %517 = vmax.xlane.f32.xlu1 %v516_v60 }
 0x439   : > { %561 = vrot.lane.b32.xlu1 %v450_v50, %s907_s11 }
 0x441   : > { %648 = vrot.lane.b32.xlu1 %v364_v27, %s908_s17 }
 0x491   : > { %v515_v61 = vpop.xlane.xlu0 %514 }
 0x492   : > { %v519_v62 = vsub.f32 %v510_v56, %v515_v61 }
 0x493   : > { %v518_v63 = vpop.xlane.xlu1 %517 }
 0x494   : > { %v521_v0 = vmul.f32 1.442695, %v519_v62  ;;  %v520_v1 = vsub.f32 %v511_v58, %v518_v63 }
 0x496   : > { %834 = vpow2.f32 %v521_v0  ;;  %v523_v2 = vmul.f32 1.442695, %v520_v1 }
 0x498   : > { %836 = vpow2.f32 %v523_v2 }
 0x49c   : > { %v835_v3 = vpop.eup %834 }
 0x49d   : > { %v525_v4 = vsel %vm512_vm13, %v835_v3, 0.0 }
 0x49e   : > { %v837_v5 = vpop.eup %836  ;;  %526 = vadd.xlane.f32.xlu2 %v525_v4 }
 0x49f   : > { %v528_v6 = vsel %vm512_vm13, %v837_v5, 0.0 }
 0x4a0   : > { %529 = vadd.xlane.f32.xlu0 %v528_v6 }
 0x4ab   : > { %v562_v7 = vpop.permute.xlu1 %561 }
 0x4ac   : > { %582 = vmatpush.msra.mxu3 %v562_v7 }
 0x4b3   : > { %v649_v37 = vpop.permute.xlu1 %648 }
 0x4b4   : > { %587 = vrot.lane.b32.xlu0 %v453_v52, %s907_s11  ;;  %s856_s11 = sshra.s32 %s682_s10, 4  ;;  %s857_s11 = int_to_ptr.hbm [resolvable:$true] %s856_s11 }
 0x4b5   : > { %p863_p0 = scmp.lt.s32.totalorder %s857_s11, %s1221_s3 }
 0x4bc   : > { %650 = vrot.lane.b32.xlu0 %v1137_v35, %s908_s17  ;;  %s858_s17 = scalar_lea.hbm %s857_s11, 16 }
 0x4bd   : > { %p859_p11 = scmp.ne.s32.totalorder %s857_s11, %s858_s17  ;;  %p864_p1 = scmp.lt.s32.totalorder %s862_s24, %s858_s17 }
 0x4bf   : > { %p860_p12 = pnand %p859_p11, %p970_p5  ;;  %p865_p2 = por %p864_p1, %p863_p0 }
 0x4c1   : > { %p861_p13 = pneg %p860_p12 }
 0x4c3   : > { %p866_p3 = pnand %p865_p2, %p861_p13 }
 0x511   : > { %v527_v8 = vpop.xlane.xlu2 %526 }
 0x512   : > { %838 = vrcp.f32 %v527_v8  ;;  %v542_v15 = vand.u32 2147483648, %v527_v8  ;;  %v540_v18 = vand.u32 2147483647, %v527_v8  ;;  %vm536_vm15 = vweird.f32 %v527_v8 }
 0x513   : > { %v530_v9 = vpop.xlane.xlu0 %529 }
 0x514   : > { %840 = vrcp.f32 %v530_v9  ;;  %v557_v19 = vand.u32 2147483648, %v530_v9  ;;  %v555_v22 = vand.u32 2147483647, %v530_v9  ;;  %v543_v23 = vor.u32 1.1754944e-38, %v542_v15 }
 0x515   : > { %vm551_vm2 = vweird.f32 %v530_v9  ;;  %vm541_vm3 = vcmp.eq.f32.partialorder %v540_v18, 8.507059e+37 }
 0x516   : > { %v558_v26 = vor.u32 1.1754944e-38, %v557_v19  ;;  %vm556_vm5 = vcmp.eq.f32.partialorder %v555_v22, 8.507059e+37 }
 0x518   : > { %v839_v10 = vpop.eup %838 }
 0x519   : > { %v532_v11 = vmul.f32 %v839_v10, %v527_v8  ;;  %vm537_vm14 = vweird.f32 %v839_v10 }
 0x51a   : > { %v841_v12 = vpop.eup %840  ;;  %vm538_vm1 = vmor %vm536_vm15, %vm537_vm14 }
 0x51b   : > { %v533_v13 = vsub.f32 1.0, %v532_v11  ;;  %v547_v14 = vmul.f32 %v841_v12, %v530_v9  ;;  %vm552_vm0 = vweird.f32 %v841_v12 }
 0x51c   : > { %vm553_vm4 = vmor %vm551_vm2, %vm552_vm0 }
 0x51d   : > { %v534_v16 = vmul.f32 %v839_v10, %v533_v13  ;;  %v548_v17 = vsub.f32 1.0, %v547_v14 }
 0x51f   : > { %v549_v20 = vmul.f32 %v841_v12, %v548_v17  ;;  %v535_v21 = vadd.f32 %v839_v10, %v534_v16 }
 0x521   : > { %v539_v24 = vsel %vm538_vm1, %v839_v10, %v535_v21  ;;  %v550_v25 = vadd.f32 %v841_v12, %v549_v20 }
 0x522   : > { %v544_v27 = vsel %vm541_vm3, %v543_v23, %v539_v24 }
 0x523   : > { %v545_v28 = vmul.f32 %v835_v3, %v544_v27  ;;  %v554_v29 = vsel %vm553_vm4, %v841_v12, %v550_v25 }
 0x524   : > { %v559_v30 = vsel %vm556_vm5, %v558_v26, %v554_v29 }
 0x525   : > { %657 = vrot.lane.b32.xlu1 %v545_v28, %s909_s19  ;;  %767 = vmatmul.msk.f32.vlgmr.msra.gmra.mxu3 %vm512_vm13, %v545_v28  ;;  %v560_v31 = vmul.f32 %v837_v5, %v559_v30 }
 0x526   : > { %v588_v32 = vpop.permute.xlu0 %587 }
 0x527   : > { %659 = vrot.lane.b32.xlu2 %v560_v31, %s909_s19  ;;  %608 = vmatpush.msra.mxu0 %v588_v32 }
 0x528   : > { %768 = vmatmul.msk.f32.vlgmr.msra.gmra.mxu0 %vm512_vm13, %v560_v31 }
 0x52e   : > { %v651_v44 = vpop.permute.xlu0 %650 }
 0x581   : > { %v660_v45 = vpop.permute.xlu2 %659 }
 0x597   : > { %v658_v41 = vpop.permute.xlu1 %657 }
 0x5a5   : > { %v610_v36 = vpop.f32.mrf.mxu0 }
 0x5a8   : > { %v584_v35 = vpop.f32.mrf.mxu3 }
 0x5a9   : > { %769 = vmatmul.msk.f32.vlgmr.msra.gmra.mxu1 %vm458_vm12, %v584_v35 }
 0x5b1   : > { %770 = vmatmul.msk.f32.gmra.mxu1 %vm458_vm12, %v610_v36 }
 0x626   : > { %v640_v39 = vpop.f32.mrf.mxu1 }
 0x627   : > { %v641_v40 = vadd.f32 %v825_v38, %v640_v39 }
 0x629   : > { %646 = vst.msk [vmem:[%s164_s5] sm:$0xff] %vm458_vm12, %v641_v40 }
 0x62a   : > { %655 = vst.msk [vmem:[%s164_s5] sm:$0xff] %vm654_vm6, %v649_v37 }
 0x62b   : > { %664 = vst.msk [vmem:[%s164_s5] sm:$0xff] %vm663_vm7, %v658_v41 }
 0x62e   : > { %v643_v42 = vpop.f32.mrf.mxu1 }
 0x62f   : > { %v644_v43 = vadd.f32 %v825_v38, %v643_v42 }
 0x631   : > { %647 = vst.msk [vmem:[%s164_s5 + $0x8] sm:$0xff] %vm458_vm12, %v644_v43 }
 0x632   : > { %656 = vst.msk [vmem:[%s164_s5 + $0x8] sm:$0xff] %vm654_vm6, %v651_v44 }
 0x633   : > { %665 = vst.msk [vmem:[%s164_s5 + $0x8] sm:$0xff] %vm663_vm7, %v660_v45 }
 0x634   : > { %869 = shalt.err (!%p866_p3)
}
 0x635   : > { %s910_s27 = smov 128   ;;  %s911_s29 = smov 8  }
 0x636   : > { %777 = dma.vmem_to_hbm [thread:$0]  (%p970_p5), %s680_s9, 256, %s682_s10, %s667_s16, %s910_s27, %s910_s27, %s911_s29  }
 0x637 PF: > { %p783_p4 = scmp.ge.s32.totalorder %s904_s15, 2  ;;  %s696_s28 = sand.u32 1, %s892_s12  }
 0x638   : > { %s697_s30 = scalar_lea.sflag [#allocation3], %s696_s28 }
 0x639   : > { %p780_p7 = pnand %p783_p4, %p974_p6 }
 0x63b   : > { %p781_p8 = pneg %p780_p7 }
 0x63d   : > { %887 = dma.done.wait (%p781_p8), %s697_s30, 256  }
 0x63e   : > { %889 = vsyncadd (%p781_p8), %s697_s30, 4294967040  ;;  %p13_p9 = scmp.ge.s32.totalorder %s957_s18, 4   ;;  %s1224_s12 = smov %s896_s13 }
 0x63f   : > { %s1225_s13 = smov %s900_s14  ;;  %s1226_s14 = smov %s968_s21 }
 0x640   : > { %s1227_s15 = smov %s957_s18  ;;  %15 = sbr.rel (!%p13_p9) target bundleno = 3 (0x3), region = 68 }
 0x645   :  { %703 = vsyncpa [#allocation3], 1 }
 0x646   :  { %705 = vsyncpa [#allocation3 + $0x1], 1 }

</bundles_post_ra>
